<compile_context>
chip_gen: v7x
topology: tpu7x:2x2x1
jax: 0.10.0
libtpu: 0.0.40
codegen_flags: <defaults>
</compile_context>

<pallas_src>
import functools
import math

import jax
import jax.numpy as jnp
from jax.experimental import pallas as pl
from jax.experimental.pallas import tpu as pltpu


def _meanstd_kernel(x_ref, params_ref, o_ref, *, clip):
    # x_ref:      (BR, PF)   observation tile (native dtype)
    # params_ref: (2,  PF)   row 0 = mean, row 1 = 1/std   (f32)
    x = x_ref[...].astype(jnp.float32)
    m = params_ref[0:1, :]          # (1, PF), broadcasts over sublanes
    inv_s = params_ref[1:2, :]      # (1, PF)
    val = (x - m) * inv_s
    if clip is not None:
        val = jnp.clip(val, -clip, clip)
    o_ref[...] = val.astype(o_ref.dtype)


def meanstd_forward(x, mean, std, clip=None, *,
                    target_tile_bytes=2 << 20,
                    vmem_limit_bytes=48 << 20):
    """Pallas implementation of MeanStd.forward.

    x:    [..., F] (f32 or bf16) -- leading dims are flattened into a batch.
    mean: [F]
    std:  [F]
    """
    orig_shape = x.shape
    F = orig_shape[-1]
    out_dtype = x.dtype
    itemsize = jnp.dtype(out_dtype).itemsize
    SUB = max(8, 32 // itemsize)        # sublane multiple: 8 f32, 16 bf16
    LANE = 128
    MAX_K = 8                           # cap lane-packing factor (awkward F -> no pack)

    x2 = x.reshape(-1, F)               # free (metadata) reshape
    B = x2.shape[0]

    mean_f = jnp.asarray(mean, jnp.float32).reshape(F)
    inv_std_f = (1.0 / jnp.asarray(std, jnp.float32)).reshape(F)

    # Lane-pack k consecutive batch rows into the lane axis when it is free
    # (pure reshape, no pad, no slice).  Otherwise keep full F as the last dim.
    k = LANE // math.gcd(F, LANE)
    if 1 < k <= MAX_K and B % k == 0:
        rows = B // k
        packed_F = k * F
        x_packed = x2.reshape(rows, packed_F)
        mean_p = jnp.tile(mean_f, k)
        inv_p = jnp.tile(inv_std_f, k)
    else:
        rows = B
        packed_F = F
        x_packed = x2
        mean_p = mean_f
        inv_p = inv_std_f
    params = jnp.stack([mean_p, inv_p], axis=0)     # (2, packed_F), one tiny DMA

    # Batch-tile sizing: ~target_tile_bytes per input tile, sublane-aligned,
    # never larger than the array, and >= 2 grid steps when splittable so the
    # "parallel" axis actually shards across TensorCores (v7x megacore).
    bytes_per_row = packed_F * itemsize
    br = max(SUB, (target_tile_bytes // max(bytes_per_row, 1)) // SUB * SUB)
    if rows <= SUB:
        br = rows                               # block dim == full array dim
    else:
        br = min(br, (rows // SUB) * SUB)
        if br >= rows:                          # would be a 1-step grid: split it
            br = min(SUB * pl.cdiv(rows, 2 * SUB), (rows // SUB) * SUB)

    grid = (pl.cdiv(rows, br),)                 # ragged final block handled by Pallas
    kernel = functools.partial(_meanstd_kernel, clip=clip)

    out_packed = pl.pallas_call(
        kernel,
        out_shape=jax.ShapeDtypeStruct((rows, packed_F), out_dtype),
        grid_spec=pltpu.PrefetchScalarGridSpec(
            num_scalar_prefetch=0,
            grid=grid,
            in_specs=[
                pl.BlockSpec((br, packed_F), lambda i: (i, 0)),
                pl.BlockSpec((2, packed_F), lambda i: (0, 0)),
            ],
            out_specs=pl.BlockSpec((br, packed_F), lambda i: (i, 0)),
        ),
        compiler_params=pltpu.CompilerParams(
            dimension_semantics=("parallel",),
            vmem_limit_bytes=vmem_limit_bytes,
        ),
    )(x_packed, params)

    return out_packed.reshape(orig_shape)


# TODO(synk): record()/update()/unnormalize() are host-side running-statistics
# bookkeeping (numpy scalars mutated outside the graph); not part of the forward
# pass, so they are not implemented as kernels.


if __name__ == "__main__":
    key = jax.random.PRNGKey(0)
    k1, k2, k3 = jax.random.split(key, 3)

    B, F = 8, 32                      # small batch of observations, feature dim
    shape = (F,)

    # Deterministic "parameters" mimicking MeanStd(shape=(F,)) after updates.
    mean = jax.random.normal(k1, shape, dtype=jnp.float32) * 0.5
    std = jnp.maximum(
        jnp.abs(jax.random.normal(k2, shape, dtype=jnp.float32)) + 0.1,
        0.01,                         # std floored at eps, as in _compute_std
    )
    clip = 5.0

    x = jax.random.normal(k3, (B, F), dtype=jnp.float32) * 3.0

    # With clip (lane-packed path: k=4, B % 4 == 0).
    out = jax.block_until_ready(meanstd_forward(x, mean, std, clip=clip))
    ref = jnp.clip((x - mean[None, :]) / std[None, :], -clip, clip)
    assert out.shape == ref.shape and out.dtype == ref.dtype
    assert jnp.allclose(out, ref, atol=1e-5, rtol=1e-5), "mismatch vs reference (clip)"

    # Without clip (other static branch).
    out2 = jax.block_until_ready(meanstd_forward(x, mean, std, clip=None))
    ref2 = (x - mean[None, :]) / std[None, :]
    assert jnp.allclose(out2, ref2, atol=1e-5, rtol=1e-5), "mismatch vs reference (no clip)"

    # Batch not divisible by the packing factor -> full-F fallback path, no pad/slice.
    xb = jax.random.normal(k3, (13, F), dtype=jnp.float32) * 3.0
    out3 = jax.block_until_ready(meanstd_forward(xb, mean, std, clip=clip))
    ref3 = jnp.clip((xb - mean[None, :]) / std[None, :], -clip, clip)
    assert jnp.allclose(out3, ref3, atol=1e-5, rtol=1e-5), "mismatch vs reference (ragged batch)"

    # bf16 input stays bf16 end-to-end (native-dtype streaming path).
    xh = (jax.random.normal(k3, (B, F), dtype=jnp.float32) * 3.0).astype(jnp.bfloat16)
    out4 = jax.block_until_ready(meanstd_forward(xh, mean, std, clip=clip))
    ref4 = jnp.clip((xh.astype(jnp.float32) - mean[None, :]) / std[None, :],
                    -clip, clip).astype(jnp.bfloat16)
    assert out4.dtype == jnp.bfloat16
    assert jnp.allclose(out4.astype(jnp.float32), ref4.astype(jnp.float32),
                        atol=3e-2, rtol=3e-2), "mismatch vs reference (bf16)"

    print("KERNEL_OK")
</pallas_src>

<mosaic_0001>
module attributes {stable_mosaic.version = 11 : i64} {
  func.func @_meanstd_kernel(%arg0: i32, %arg1: memref<2x128xf32, #tpu.memory_space<vmem>>, %arg2: memref<2x128xf32, #tpu.memory_space<vmem>>, %arg3: memref<2x128xf32, #tpu.memory_space<vmem>>) attributes {dimension_semantics = [#tpu.dimension_semantics<parallel>], iteration_bounds = array<i64: 1>, scalar_prefetch = 0 : i64, scratch_operands = 0 : i64, tpu.core_type = #tpu.core_type<tc>, window_params = [{transform_indices = @transform_0, window_bounds = array<i64: 2, 128>}, {pipeline_mode = #tpu.pipeline_mode<synchronous>, transform_indices = @transform_1, window_bounds = array<i64: 2, 128>}, {transform_indices = @transform_2, window_bounds = array<i64: 2, 128>}]} {
    %c0 = arith.constant 0 : index
    %c0_0 = arith.constant 0 : index
    %0 = vector.load %arg1[%c0, %c0_0] : memref<2x128xf32, #tpu.memory_space<vmem>>, vector<2x128xf32>
    %c0_1 = arith.constant 0 : index
    %c0_2 = arith.constant 0 : index
    %1 = vector.load %arg2[%c0_1, %c0_2] : memref<2x128xf32, #tpu.memory_space<vmem>>, vector<1x128xf32>
    %c1 = arith.constant 1 : index
    %c0_3 = arith.constant 0 : index
    %2 = vector.load %arg2[%c1, %c0_3] : memref<2x128xf32, #tpu.memory_space<vmem>>, vector<1x128xf32>
    %3 = vector.broadcast %1 : vector<1x128xf32> to vector<2x128xf32>
    %4 = arith.subf %0, %3 : vector<2x128xf32>
    %5 = vector.broadcast %2 : vector<1x128xf32> to vector<2x128xf32>
    %6 = arith.mulf %4, %5 : vector<2x128xf32>
    %cst = arith.constant -5.000000e+00 : f32
    %cst_4 = arith.constant 5.000000e+00 : f32
    %7 = vector.broadcast %cst : f32 to vector<2x128xf32>
    %8 = arith.maximumf %7, %6 : vector<2x128xf32>
    %9 = vector.broadcast %cst_4 : f32 to vector<2x128xf32>
    %10 = arith.minimumf %9, %8 : vector<2x128xf32>
    %c0_5 = arith.constant 0 : index
    %c0_6 = arith.constant 0 : index
    %11 = vector.load %arg3[%c0_5, %c0_6] : memref<2x128xf32, #tpu.memory_space<vmem>>, vector<2x128xf32>
    tpu.vector_store %arg3[%c0_5, %c0_6], %10 {strides = array<i32>} : memref<2x128xf32, #tpu.memory_space<vmem>>, vector<2x128xf32>,
    return
  }
  func.func @transform_0(%arg0: i32) -> (i32, i32) {
    %c0_i32 = arith.constant 0 : i32
    %c0_i32_0 = arith.constant 0 : i32
    return %arg0, %c0_i32 : i32, i32
  }
  func.func @transform_1(%arg0: i32) -> (i32, i32) {
    %c0_i32 = arith.constant 0 : i32
    %c0_i32_0 = arith.constant 0 : i32
    %c0_i32_1 = arith.constant 0 : i32
    return %c0_i32, %c0_i32_0 : i32, i32
  }
  func.func @transform_2(%arg0: i32) -> (i32, i32) {
    %c0_i32 = arith.constant 0 : i32
    %c0_i32_0 = arith.constant 0 : i32
    return %arg0, %c0_i32 : i32, i32
  }
}

</mosaic_0001>

<bundles_post_ra>
// kernel: tpu_custom_call.1
= control target key start
LH: loop header
LB: loop body
LE: loop exit
PB: predicated region body
PF: predicated region fallthrough
CT: control target
= control target key end

     0   :  { %7 = vsyncpa [#allocation3], 0  ;;  %s155_s0 = inlined_call_operand.hbm [shape: f32[2,128], index: 0, kind: input, shape index: {}]   ;;  %s156_s1 = inlined_call_operand.vmem [shape: f32[2,128], index: 1, kind: input, shape index: {}]   ;;  %s157_s2 = inlined_call_operand.hbm [shape: f32[2,128], index: 2, kind: output, shape index: {}]  }
   0x1   :  { %8 = vsyncpa [#allocation4], 0  ;;  %s108_s9 = smov [#allocation2]   ;;  %s60_s13 = scalar_lea.hbm %s155_s0, 32 }
   0x2   :  { %s15_s10 = sshll.u32 %s108_s9, 4  ;;  %p61_p0 = scmp.ne.s32.totalorder %s155_s0, %s60_s13  ;;  %s16_s10 = int_to_ptr.vmem [resolvable:$true] %s15_s10 }
   0x3   :  { %p64_p1 = scmp.lt.u32.totalorder %s60_s13, %s155_s0 }
   0x5   :  { %p66_p2 = pnand %p64_p1, %p61_p0 }
   0x7   :  { %69 = shalt.err (!%p66_p2)
}
   0x8   :  { %s70_s18 = scalar_lea.vmem %s16_s10, 32  ;;  %p75_p4 = scmp.lt.s32.totalorder %s16_s10, %s16_s10 }
   0x9   :  { %p71_p3 = scmp.ne.s32.totalorder %s16_s10, %s70_s18  ;;  %p76_p5 = scmp.lt.s32.totalorder %s70_s18, %s70_s18 }
   0xb   :  { %p77_p6 = por %p76_p5, %p75_p4 }
   0xd   :  { %p78_p7 = pnand %p77_p6, %p71_p3 }
   0xf   :  { %81 = shalt.err (!%p78_p7)
}
  0x10   :  { %18 = dma.hbm_to_vmem [thread:$0]  %s155_s0, 32, %s16_s10, [#allocation3]  }
  0x11   :  { %104 = dma.done.wait [#allocation3], 32  }
  0x12   :  { %105 = vsyncadd [#allocation3], 4294967264  ;;  %v24_v0 = vld [vmem:[#allocation2] sm:$0x3]  ;;  %s109_s25 = smov [#allocation5]  }
  0x13   :  { %v55_v1 = vld [vmem:[%s156_s1] ss:$0 sm:$0xff]  ;;  %v56_v2 = vld [vmem:[%s156_s1 + $0x1] ss:$0 sm:$0xff]  ;;  %s46_s26 = sshll.u32 %s109_s25, 4  ;;  %s47_s26 = int_to_ptr.vmem [resolvable:$true] %s46_s26 }
  0x14   :  { %v31_v3 = vsub.f32 %v24_v0, %v55_v1  ;;  %s82_s27 = scalar_lea.vmem %s47_s26, 32  ;;  %p87_p9 = scmp.lt.s32.totalorder %s47_s26, %s47_s26 }
  0x15   :  { %p83_p8 = scmp.ne.s32.totalorder %s47_s26, %s82_s27  ;;  %p88_p10 = scmp.lt.s32.totalorder %s82_s27, %s82_s27 }
  0x16   :  { %v36_v4 = vmul.f32 %v56_v2, %v31_v3 }
  0x17   :  { %p89_p11 = por %p88_p10, %p87_p9 }
  0x18   :  { %v57_v5 = vclamps-f32 %v36_v4, 5.0 }
  0x19   :  { %p90_p12 = pnand %p89_p11, %p83_p8 }
  0x1a   :  { %39 = vst [vmem:[#allocation5] sm:$0x3] %v57_v5 }
  0x1b   :  { %93 = shalt.err (!%p90_p12)
}
  0x1c   :  { %s94_s29 = scalar_lea.hbm %s157_s2, 32 }
  0x1d   :  { %p95_p13 = scmp.ne.s32.totalorder %s157_s2, %s94_s29  ;;  %p98_p0 = scmp.lt.u32.totalorder %s94_s29, %s157_s2 }
  0x1f   :  { %p100_p1 = pnand %p98_p0, %p95_p13 }
  0x21   :  { %103 = shalt.err (!%p100_p1)
}
  0x22   :  { %49 = dma.vmem_to_hbm [thread:$0]  %s47_s26, 32, %s157_s2, [#allocation4]  }
  0x23   :  { %106 = dma.done.wait [#allocation4], 32  }
  0x24   :  { %107 = vsyncadd [#allocation4], 4294967264 }
  0x25   :  { %53 = vsyncpa [#allocation3], 1 }
  0x26   :  { %54 = vsyncpa [#allocation4], 1 }

</bundles_post_ra>
